<compile_context>
chip_gen: v7x
topology: tpu7x:2x2x1
jax: 0.10.0
libtpu: 0.0.40
codegen_flags: <defaults>
</compile_context>

<pallas_src>
import jax
import jax.numpy as jnp
from jax.experimental import pallas as pl
from jax.experimental.pallas import tpu as pltpu


# ----------------------------- kernel -------------------------------------


def _gate_kernel_factory(threshold_fine, threshold_median):
    """Kernel with the fixed thresholds baked in (compile-time constants from
    the router's __init__)."""

    tf = float(threshold_fine)
    tm = float(threshold_median)

    def gate_kernel(entropy_ref, gate_ref):
        e = entropy_ref[...].astype(jnp.float32)               # (TR, C)
        # fine   : entropy >  threshold_fine
        # coarse : entropy <= threshold_median
        # median : everything else (tm < entropy <= tf) -> one compare saved
        fine = e > tf
        coarse = e <= tm
        median = jnp.logical_not(jnp.logical_or(fine, coarse))
        gate_ref[0, :, :] = coarse.astype(jnp.int8)
        gate_ref[1, :, :] = median.astype(jnp.int8)
        gate_ref[2, :, :] = fine.astype(jnp.int8)

    return gate_kernel


# ----------------------------- wrapper -------------------------------------


def _round_up(x, m):
    return (x + m - 1) // m * m


_LANE = 128                    # minimum lane width (unmasked vector ops)
_MAX_LANES = 1024              # widest lane slab we bother with
_ROW_ALIGN = 32                # int8 sublane tile (32,128) -> unmasked stores
_TARGET_BLOCK_ELEMS = 512 * 1024   # ~2 MiB f32 in + 1.5 MiB int8 out per block
_MIN_PALLAS_ELEMS = 8 * _LANE      # below one (8,128) tile, plain XLA wins


class TripleGrainFixedEntropyRouter:
    """JAX/Pallas re-implementation of the PyTorch router.

    Instead of reading a JSON checkpoint of entropy thresholds, a deterministic
    synthetic threshold table (keys "0".."100") is built in-script.
    """

    def __init__(self, entropy_thresholds, fine_grain_ratio, median_grain_ratio,
                 out_dtype=jnp.int8):
        self.entropy_thresholds = entropy_thresholds
        self.fine_grain_threshold = self.entropy_thresholds[
            f"{int(100 - fine_grain_ratio * 100)}"
        ]
        self.median_grain_threshold = self.entropy_thresholds[
            f"{int(100 - (fine_grain_ratio + median_grain_ratio) * 100)}"
        ]
        self.out_dtype = out_dtype

    def __call__(self, h_fine=None, h_median=None, h_coarse=None, entropy=None):
        assert entropy is not None
        B, H, W = entropy.shape
        M = B * H * W
        tf = self.fine_grain_threshold
        tm = self.median_grain_threshold

        if entropy.dtype not in (jnp.float32, jnp.bfloat16):
            entropy = entropy.astype(jnp.float32)
        e_flat = entropy.reshape(M)

        # ---- tiny-input fast path: one fused XLA elementwise op ------------
        if M < _MIN_PALLAS_ELEMS:
            fine = e_flat > tf
            coarse = e_flat <= tm
            median = jnp.logical_not(jnp.logical_or(fine, coarse))
            gate = jnp.stack([coarse, median, fine], axis=-1).astype(self.out_dtype)
            return gate.reshape(B, H, W, 3)

        # ---- lane/sublane-dense 2D view (minimal padding) ------------------
        m_pad = _round_up(M, _LANE)            # pad <= 127 elements, often 0
        C = _LANE
        while C < _MAX_LANES and m_pad % (2 * C) == 0:
            C *= 2
        rows = m_pad // C

        # Block rows: big blocks (~512K elems), multiple of 32 for unmasked
        # int8 stores; keep >= 2 grid steps when rows allow (megacore).
        tr = min(rows, max(_ROW_ALIGN,
                           (_TARGET_BLOCK_ELEMS // C) // _ROW_ALIGN * _ROW_ALIGN))
        if rows >= 2 * _ROW_ALIGN:
            tr = min(tr, _round_up(pl.cdiv(rows, 2), _ROW_ALIGN))
        grid = (pl.cdiv(rows, tr),)            # ragged last block is OK

        if m_pad != M:
            e_flat = jnp.pad(e_flat, (0, m_pad - M))
        e2d = e_flat.reshape(rows, C)

        kernel = _gate_kernel_factory(tf, tm)

        slab = pl.pallas_call(
            kernel,
            out_shape=jax.ShapeDtypeStruct((3, rows, C), jnp.int8),
            grid_spec=pltpu.PrefetchScalarGridSpec(
                num_scalar_prefetch=0,
                grid=grid,
                in_specs=[pl.BlockSpec((tr, C), lambda i: (i, 0))],
                out_specs=pl.BlockSpec((3, tr, C), lambda i: (0, i, 0)),
            ),
            compiler_params=pltpu.CompilerParams(
                dimension_semantics=("parallel",),
                # 2 buffers x (2 MiB in + 1.5 MiB out) ~= 7 MiB: fits every
                # chip's scoped default, but set the budget explicitly anyway.
                vmem_limit_bytes=32 * 1024 * 1024,
            ),
        )(e2d)

        # (3, rows, C) int8 -> (rows*C, 3) -> drop padded tail -> (B, H, W, 3)
        gate = jnp.moveaxis(slab, 0, -1).reshape(m_pad, 3)
        if m_pad != M:
            gate = gate[:M]
        gate = gate.reshape(B, H, W, 3)
        if gate.dtype != self.out_dtype:
            gate = gate.astype(self.out_dtype)
        return gate


# ----------------------------- reference / test ----------------------------


def _reference_gate(entropy, threshold_fine, threshold_median):
    gate_fine = (entropy > threshold_fine).astype(jnp.int32)[..., None]
    gate_median = (
        jnp.logical_and(entropy <= threshold_fine, entropy > threshold_median)
    ).astype(jnp.int32)[..., None]
    gate_coarse = (entropy <= threshold_median).astype(jnp.int32)[..., None]
    return jnp.concatenate([gate_coarse, gate_median, gate_fine], axis=-1)


if __name__ == "__main__":
    # Deterministic synthetic entropy-threshold table (stands in for the JSON
    # file of per-percentile entropy thresholds).
    entropy_thresholds = {str(p): 0.05 * p for p in range(101)}

    fine_grain_ratio = 0.3
    median_grain_ratio = 0.3
    router = TripleGrainFixedEntropyRouter(
        entropy_thresholds, fine_grain_ratio, median_grain_ratio
    )

    key = jax.random.PRNGKey(0)
    test_shapes = [
        (2, 64, 64),   # Pallas path: lane-dense, no padding needed
        (1, 40, 50),   # Pallas path: ragged size -> minimal-pad path exercised
        (2, 16, 16),   # tiny input  -> fused pure-XLA fast path
    ]
    for idx, shape in enumerate(test_shapes):
        k = jax.random.fold_in(key, idx)
        entropy = jax.random.uniform(
            k, shape, dtype=jnp.float32, minval=0.0, maxval=5.0
        )
        gate = jax.block_until_ready(router(entropy=entropy))
        ref = _reference_gate(
            entropy, router.fine_grain_threshold, router.median_grain_threshold
        )
        assert gate.shape == shape + (3,), (gate.shape, shape)
        assert bool(jnp.all(gate == ref)), f"mismatch vs reference for {shape}"
        assert bool(jnp.all(gate.sum(axis=-1) == 1)), "gate must be one-hot"

    print("KERNEL_OK")
</pallas_src>

<mosaic_0001>
module attributes {stable_mosaic.version = 11 : i64} {
  func.func @gate_kernel(%arg0: i32, %arg1: memref<8x1024xf32, #tpu.memory_space<vmem>>, %arg2: memref<3x8x1024xi8, #tpu.memory_space<vmem>>) attributes {dimension_semantics = [#tpu.dimension_semantics<parallel>], iteration_bounds = array<i64: 1>, scalar_prefetch = 0 : i64, scratch_operands = 0 : i64, tpu.core_type = #tpu.core_type<tc>, window_params = [{transform_indices = @transform_0, window_bounds = array<i64: 8, 1024>}, {transform_indices = @transform_1, window_bounds = array<i64: 3, 8, 1024>}]} {
    %c0 = arith.constant 0 : index
    %c0_0 = arith.constant 0 : index
    %0 = vector.load %arg1[%c0, %c0_0] : memref<8x1024xf32, #tpu.memory_space<vmem>>, vector<8x1024xf32>
    %cst = arith.constant 3.500000e+00 : f32
    %1 = vector.broadcast %cst : f32 to vector<8x1024xf32>
    %2 = arith.cmpf ogt, %0, %1 : vector<8x1024xf32>
    %cst_1 = arith.constant 2.000000e+00 : f32
    %3 = vector.broadcast %cst_1 : f32 to vector<8x1024xf32>
    %4 = arith.cmpf ole, %0, %3 : vector<8x1024xf32>
    %5 = arith.ori %2, %4 : vector<8x1024xi1>
    %cst_2 = arith.constant dense<true> : vector<8x1024xi1>
    %6 = arith.xori %5, %cst_2 : vector<8x1024xi1>
    %7 = arith.extui %4 : vector<8x1024xi1> to vector<8x1024xi8>
    %c0_3 = arith.constant 0 : index
    %c0_4 = arith.constant 0 : index
    %c0_5 = arith.constant 0 : index
    %8 = vector.load %arg2[%c0_3, %c0_4, %c0_5] : memref<3x8x1024xi8, #tpu.memory_space<vmem>>, vector<1x8x1024xi8>
    %9 = vector.shape_cast %8 : vector<1x8x1024xi8> to vector<8x1024xi8>
    %10 = vector.shape_cast %7 : vector<8x1024xi8> to vector<1x8x1024xi8>
    tpu.vector_store %arg2[%c0_3, %c0_4, %c0_5], %10 {strides = array<i32>} : memref<3x8x1024xi8, #tpu.memory_space<vmem>>, vector<1x8x1024xi8>,
    %11 = arith.extui %6 : vector<8x1024xi1> to vector<8x1024xi8>
    %c1 = arith.constant 1 : index
    %c0_6 = arith.constant 0 : index
    %c0_7 = arith.constant 0 : index
    %12 = vector.load %arg2[%c1, %c0_6, %c0_7] : memref<3x8x1024xi8, #tpu.memory_space<vmem>>, vector<1x8x1024xi8>
    %13 = vector.shape_cast %12 : vector<1x8x1024xi8> to vector<8x1024xi8>
    %14 = vector.shape_cast %11 : vector<8x1024xi8> to vector<1x8x1024xi8>
    tpu.vector_store %arg2[%c1, %c0_6, %c0_7], %14 {strides = array<i32>} : memref<3x8x1024xi8, #tpu.memory_space<vmem>>, vector<1x8x1024xi8>,
    %15 = arith.extui %2 : vector<8x1024xi1> to vector<8x1024xi8>
    %c2 = arith.constant 2 : index
    %c0_8 = arith.constant 0 : index
    %c0_9 = arith.constant 0 : index
    %16 = vector.load %arg2[%c2, %c0_8, %c0_9] : memref<3x8x1024xi8, #tpu.memory_space<vmem>>, vector<1x8x1024xi8>
    %17 = vector.shape_cast %16 : vector<1x8x1024xi8> to vector<8x1024xi8>
    %18 = vector.shape_cast %15 : vector<8x1024xi8> to vector<1x8x1024xi8>
    tpu.vector_store %arg2[%c2, %c0_8, %c0_9], %18 {strides = array<i32>} : memref<3x8x1024xi8, #tpu.memory_space<vmem>>, vector<1x8x1024xi8>,
    return
  }
  func.func @transform_0(%arg0: i32) -> (i32, i32) {
    %c0_i32 = arith.constant 0 : i32
    %c0_i32_0 = arith.constant 0 : i32
    return %arg0, %c0_i32 : i32, i32
  }
  func.func @transform_1(%arg0: i32) -> (i32, i32, i32) {
    %c0_i32 = arith.constant 0 : i32
    %c0_i32_0 = arith.constant 0 : i32
    %c0_i32_1 = arith.constant 0 : i32
    return %c0_i32, %arg0, %c0_i32_0 : i32, i32, i32
  }
}

</mosaic_0001>

<bundles_post_ra>
// kernel: tpu_custom_call.1
= control target key start
LH: loop header
LB: loop body
LE: loop exit
PB: predicated region body
PF: predicated region fallthrough
CT: control target
= control target key end

     0   :  { %6 = vsyncpa [#allocation3], 0  ;;  %s447_s0 = inlined_call_operand.hbm [shape: f32[8,1024], index: 0, kind: input, shape index: {}]   ;;  %s448_s1 = inlined_call_operand.hbm [shape: s8[3,8,1024], index: 1, kind: output, shape index: {}]  }
   0x1   :  { %7 = vsyncpa [#allocation4], 0  ;;  %s256_s6 = smov [#allocation2]   ;;  %s208_s10 = scalar_lea.hbm %s447_s0, 1024 }
   0x2   :  { %s14_s7 = sshll.u32 %s256_s6, 4  ;;  %p209_p0 = scmp.ne.s32.totalorder %s447_s0, %s208_s10  ;;  %s15_s7 = int_to_ptr.vmem [resolvable:$true] %s14_s7 }
   0x3   :  { %p212_p1 = scmp.lt.u32.totalorder %s208_s10, %s447_s0 }
   0x5   :  { %p214_p2 = pnand %p212_p1, %p209_p0 }
   0x7   :  { %217 = shalt.err (!%p214_p2)
}
   0x8   :  { %s218_s15 = scalar_lea.vmem %s15_s7, 1024  ;;  %p223_p4 = scmp.lt.s32.totalorder %s15_s7, %s15_s7 }
   0x9   :  { %p219_p3 = scmp.ne.s32.totalorder %s15_s7, %s218_s15  ;;  %p224_p5 = scmp.lt.s32.totalorder %s218_s15, %s218_s15 }
   0xb   :  { %p225_p6 = por %p224_p5, %p223_p4 }
   0xd   :  { %p226_p7 = pnand %p225_p6, %p219_p3 }
   0xf   :  { %229 = shalt.err (!%p226_p7)
}
  0x10   :  { %17 = dma.hbm_to_vmem [thread:$0]  %s447_s0, 1024, %s15_s7, [#allocation3]  }
  0x11   :  { %252 = dma.done.wait [#allocation3], 1024  }
  0x12   :  { %253 = vsyncadd [#allocation3], 4294966272  ;;  %v284_v0 = vld [vmem:[#allocation2] sm:$0xff]  ;;  %v286_v1 = vld [vmem:[#allocation2 + $0x8] sm:$0xff]  ;;  %v257_v4 = vmov 0   ;;  %s259_s0 = smov [#allocation5]  }
  0x13   :  { %vm39_vm0 = vcmp.le.f32.partialorder %v284_v0, 2.0  ;;  %v289_v2 = vld [vmem:[#allocation2 + $0x10] sm:$0xff]  ;;  %vm40_vm2 = vcmp.le.f32.partialorder %v286_v1, 2.0  ;;  %v295_v3 = vld [vmem:[#allocation2 + $0x18] sm:$0xff]  ;;  %v306_v7 = vld [vmem:[#allocation2 + $0x20] sm:$0xff]  ;;  %s190_s18 = sshll.u32 %s259_s0, 4  ;;  %s191_s18 = int_to_ptr.vmem [resolvable:$true] %s190_s18 }
  0x14   :  { %vm63_vm1 = vmpackc.low %vm39_vm0, %vm39_vm0  ;;  %vm41_vm5 = vcmp.le.f32.partialorder %v289_v2, 2.0  ;;  %vm42_vm8 = vcmp.le.f32.partialorder %v295_v3, 2.0  ;;  %v313_v11 = vld [vmem:[#allocation2 + $0x28] sm:$0xff]  ;;  %vm43_vm12 = vcmp.le.f32.partialorder %v306_v7, 2.0  ;;  %v317_v14 = vld [vmem:[#allocation2 + $0x30] sm:$0xff]  ;;  %s230_s19 = scalar_lea.vmem %s191_s18, 768  ;;  %p235_p9 = scmp.lt.s32.totalorder %s191_s18, %s191_s18 }
  0x15   :  { %vm64_vm3 = vmpackc.even %vm63_vm1, %vm63_vm1  ;;  %vm44_vm14 = vcmp.le.f32.partialorder %v313_v11, 2.0  ;;  %v323_v17 = vld [vmem:[#allocation2 + $0x38] sm:$0xff]  ;;  %p231_p8 = scmp.ne.s32.totalorder %s191_s18, %s230_s19  ;;  %p236_p10 = scmp.lt.s32.totalorder %s230_s19, %s230_s19 }
  0x16   :  { %vm65_vm4 = vmpackc.low %vm40_vm2, %vm40_vm2  ;;  %v79_v5 = vsel %vm64_vm3, 16843009, %v257_v4  ;;  %vm451_vm3 = vcmp.le.f32.partialorder %v317_v14, 2.0 }
  0x17   :  { %vm66_vm6 = vmpackc.even %vm65_vm4, %vm65_vm4  ;;  %v87_v8 = vunpack.c.0.s8 %v79_v5  ;;  %p237_p11 = por %p236_p10, %p235_p9 }
  0x18   :  { %vm67_vm7 = vmpackc.low %vm41_vm5, %vm41_vm5  ;;  %v80_v6 = vsel %vm66_vm6, 16843009, %v257_v4 }
  0x19   :  { %vm68_vm9 = vmpackc.even %vm67_vm7, %vm67_vm7  ;;  %v88_v9 = vunpack.c.0.s8 %v80_v6  ;;  %vm450_vm7 = vcmp.gt.f32.partialorder %v284_v0, 3.5  ;;  %p238_p12 = pnand %p237_p11, %p231_p8 }
  0x1a   :  { %vm69_vm10 = vmpackc.low %vm42_vm8, %vm42_vm8  ;;  %v81_v10 = vsel %vm68_vm9, 16843009, %v257_v4  ;;  %vm449_vm9 = vcmp.le.f32.partialorder %v323_v17, 2.0 }
  0x1b   :  { %vm70_vm11 = vmpackc.even %vm69_vm10, %vm69_vm10  ;;  %v89_v12 = vunpack.c.0.s8 %v81_v10  ;;  %v95_v16 = vpack.c.b16 %v88_v9, %v87_v8 }
  0x1c   :  { %v82_v13 = vsel %vm70_vm11, 16843009, %v257_v4  ;;  %vm71_vm13 = vmpackc.low %vm43_vm12, %vm43_vm12 }
  0x1d   :  { %v90_v15 = vunpack.c.0.s8 %v82_v13  ;;  %vm72_vm15 = vmpackc.even %vm71_vm13, %vm71_vm13  ;;  %vm453_vm13 = vcmp.gt.f32.partialorder %v286_v1, 3.5 }
  0x1e   :  { %vm73_vm1 = vmpackc.low %vm44_vm14, %vm44_vm14  ;;  %v83_v18 = vsel %vm72_vm15, 16843009, %v257_v4 }
  0x1f   :  { %v96_v19 = vpack.c.b16 %v90_v15, %v89_v12  ;;  %vm74_vm4 = vmpackc.even %vm73_vm1, %vm73_vm1  ;;  %v91_v22 = vunpack.c.0.s8 %v83_v18  ;;  %vm452_vm1 = vcmp.gt.f32.partialorder %v289_v2, 3.5 }
  0x20   :  { %vm75_vm6 = vmpackc.low %vm451_vm3, %vm451_vm3  ;;  %v84_v20 = vsel %vm74_vm4, 16843009, %v257_v4  ;;  %vm454_vm4 = vcmp.gt.f32.partialorder %v295_v3, 3.5 }
  0x21   :  { %v97_v21 = vpack.c.b8 %v96_v19, %v95_v16  ;;  %vm76_vm10 = vmpackc.even %vm75_vm6, %vm75_vm6  ;;  %v92_v23 = vunpack.c.0.s8 %v84_v20 }
  0x22   :  { %vm77_vm11 = vmpackc.low %vm449_vm9, %vm449_vm9  ;;  %v85_v24 = vsel %vm76_vm10, 16843009, %v257_v4  ;;  %vm258_vm9 = vmmov 1  }
  0x23   :  { %101 = vst [vmem:[#allocation5] sm:$0xff] %v97_v21  ;;  %vm78_vm15 = vmpackc.even %vm77_vm11, %vm77_vm11  ;;  %v93_v25 = vunpack.c.0.s8 %v85_v24  ;;  %v98_v28 = vpack.c.b16 %v92_v23, %v91_v22 }
  0x24   :  { %v86_v26 = vsel %vm78_vm15, 16843009, %v257_v4  ;;  %vm47_vm6 = vmor %vm450_vm7, %vm39_vm0 }
  0x25   :  { %v94_v27 = vunpack.c.0.s8 %v86_v26  ;;  %vm48_vm10 = vmor %vm453_vm13, %vm40_vm2 }
  0x26   :  { %vm49_vm11 = vmor %vm452_vm1, %vm41_vm5 }
  0x27   :  { %v99_v29 = vpack.c.b16 %v94_v27, %v93_v25  ;;  %vm50_vm15 = vmor %vm454_vm4, %vm42_vm8 }
  0x28   :  { %vm55_vm0 = vmxor %vm47_vm6, %vm258_vm9 }
  0x29   :  { %v100_v30 = vpack.c.b8 %v99_v29, %v98_v28  ;;  %vm56_vm7 = vmxor %vm48_vm10, %vm258_vm9  ;;  %vm456_vm10 = vcmp.gt.f32.partialorder %v306_v7, 3.5 }
  0x2a   :  { %vm57_vm3 = vmxor %vm49_vm11, %vm258_vm9 }
  0x2b   :  { %102 = vst [vmem:[#allocation5 + $0x8] sm:$0xff] %v100_v30  ;;  %vm364_vm2 = vmxor %vm50_vm15, %vm258_vm9  ;;  %vm455_vm15 = vcmp.gt.f32.partialorder %v313_v11, 3.5 }
  0x2c   :  { %vm103_vm5 = vmpackc.low %vm55_vm0, %vm55_vm0  ;;  %vm460_vm0 = vcmp.le.f32.partialorder %v317_v14, 2.0 }
  0x2d   :  { %vm104_vm1 = vmpackc.even %vm103_vm5, %vm103_vm5  ;;  %vm461_vm5 = vcmp.le.f32.partialorder %v323_v17, 2.0 }
  0x2e   :  { %vm105_vm13 = vmpackc.low %vm56_vm7, %vm56_vm7  ;;  %v119_v32 = vsel %vm104_vm1, 16843009, %v257_v4 }
  0x2f   :  { %vm106_vm8 = vmpackc.even %vm105_vm13, %vm105_vm13  ;;  %v127_v34 = vunpack.c.0.s8 %v119_v32  ;;  %vm457_vm13 = vcmp.gt.f32.partialorder %v317_v14, 3.5 }
  0x30   :  { %vm107_vm4 = vmpackc.low %vm57_vm3, %vm57_vm3  ;;  %v120_v33 = vsel %vm106_vm8, 16843009, %v257_v4  ;;  %vm38_vm3 = vcmp.gt.f32.partialorder %v323_v17, 3.5 }
  0x31   :  { %vm108_vm6 = vmpackc.even %vm107_vm4, %vm107_vm4  ;;  %v128_v35 = vunpack.c.0.s8 %v120_v33 }
  0x32   :  { %vm109_vm11 = vmpackc.low %vm364_vm2, %vm364_vm2  ;;  %v121_v36 = vsel %vm108_vm6, 16843009, %v257_v4 }
  0x33   :  { %vm110_vm7 = vmpackc.even %vm109_vm11, %vm109_vm11  ;;  %v129_v37 = vunpack.c.0.s8 %v121_v36  ;;  %v135_v40 = vpack.c.b16 %v128_v35, %v127_v34 }
  0x34   :  { %v122_v38 = vsel %vm110_vm7, 16843009, %v257_v4  ;;  %vm51_vm1 = vmor %vm456_vm10, %vm43_vm12 }
  0x35   :  { %v130_v39 = vunpack.c.0.s8 %v122_v38  ;;  %vm52_vm4 = vmor %vm455_vm15, %vm44_vm14 }
  0x36   :  { %vm53_vm2 = vmor %vm457_vm13, %vm460_vm0 }
  0x37   :  { %v136_v41 = vpack.c.b16 %v130_v39, %v129_v37  ;;  %vm54_vm8 = vmor %vm38_vm3, %vm461_vm5 }
  0x38   :  { %vm59_vm12 = vmxor %vm51_vm1, %vm258_vm9 }
  0x39   :  { %v137_v42 = vpack.c.b8 %v136_v41, %v135_v40  ;;  %vm60_vm6 = vmxor %vm52_vm4, %vm258_vm9 }
  0x3a   :  { %vm61_vm11 = vmxor %vm53_vm2, %vm258_vm9 }
  0x3b   :  { %142 = vst [vmem:[#allocation5 + $0x10] sm:$0xff] %v137_v42  ;;  %vm62_vm14 = vmxor %vm54_vm8, %vm258_vm9  ;;  %vm462_vm9 = vcmp.gt.f32.partialorder %v284_v0, 3.5 }
  0x3c   :  { %vm111_vm7 = vmpackc.low %vm59_vm12, %vm59_vm12  ;;  %vm464_vm12 = vcmp.gt.f32.partialorder %v289_v2, 3.5 }
  0x3d   :  { %vm112_vm15 = vmpackc.even %vm111_vm7, %vm111_vm7 }
  0x3e   :  { %vm113_vm10 = vmpackc.low %vm60_vm6, %vm60_vm6  ;;  %v123_v43 = vsel %vm112_vm15, 16843009, %v257_v4  ;;  %vm463_vm15 = vcmp.gt.f32.partialorder %v286_v1, 3.5 }
  0x3f   :  { %vm114_vm0 = vmpackc.even %vm113_vm10, %vm113_vm10  ;;  %v131_v45 = vunpack.c.0.s8 %v123_v43 }
  0x40   :  { %vm115_vm13 = vmpackc.low %vm61_vm11, %vm61_vm11  ;;  %v124_v44 = vsel %vm114_vm0, 16843009, %v257_v4 }
  0x41   :  { %vm116_vm5 = vmpackc.even %vm115_vm13, %vm115_vm13  ;;  %v132_v46 = vunpack.c.0.s8 %v124_v44 }
  0x42   :  { %vm117_vm1 = vmpackc.low %vm62_vm14, %vm62_vm14  ;;  %v125_v47 = vsel %vm116_vm5, 16843009, %v257_v4  ;;  %vm465_vm14 = vcmp.gt.f32.partialorder %v295_v3, 3.5  ;;  %vm466_vm5 = vcmp.gt.f32.partialorder %v306_v7, 3.5 }
  0x43   :  { %vm118_vm4 = vmpackc.even %vm117_vm1, %vm117_vm1  ;;  %v133_v48 = vunpack.c.0.s8 %v125_v47  ;;  %v138_v51 = vpack.c.b16 %v132_v46, %v131_v45 }
  0x44   :  { %v126_v49 = vsel %vm118_vm4, 16843009, %v257_v4  ;;  %vm144_vm2 = vmpackc.low %vm462_vm9, %vm462_vm9  ;;  %vm467_vm9 = vcmp.gt.f32.partialorder %v313_v11, 3.5 }
  0x45   :  { %v134_v50 = vunpack.c.0.s8 %v126_v49  ;;  %vm145_vm10 = vmpackc.even %vm144_vm2, %vm144_vm2 }
  0x46   :  { %vm146_vm13 = vmpackc.low %vm463_vm15, %vm463_vm15  ;;  %v160_v52 = vsel %vm145_vm10, 16843009, %v257_v4  ;;  %vm468_vm15 = vcmp.gt.f32.partialorder %v317_v14, 3.5 }
  0x47   :  { %v139_v53 = vpack.c.b16 %v134_v50, %v133_v48  ;;  %vm147_vm8 = vmpackc.even %vm146_vm13, %vm146_vm13  ;;  %v168_v56 = vunpack.c.0.s8 %v160_v52 }
  0x48   :  { %vm148_vm6 = vmpackc.low %vm464_vm12, %vm464_vm12  ;;  %v161_v54 = vsel %vm147_vm8, 16843009, %v257_v4 }
  0x49   :  { %v140_v55 = vpack.c.b8 %v139_v53, %v138_v51  ;;  %vm149_vm11 = vmpackc.even %vm148_vm6, %vm148_vm6  ;;  %v169_v57 = vunpack.c.0.s8 %v161_v54 }
  0x4a   :  { %vm150_vm7 = vmpackc.low %vm465_vm14, %vm465_vm14  ;;  %v162_v58 = vsel %vm149_vm11, 16843009, %v257_v4 }
  0x4b   :  { %143 = vst [vmem:[#allocation5 + $0x18] sm:$0xff] %v140_v55  ;;  %vm151_vm0 = vmpackc.even %vm150_vm7, %vm150_vm7  ;;  %v170_v59 = vunpack.c.0.s8 %v162_v58  ;;  %v176_v62 = vpack.c.b16 %v169_v57, %v168_v56 }
  0x4c   :  { %v163_v60 = vsel %vm151_vm0, 16843009, %v257_v4  ;;  %vm152_vm1 = vmpackc.low %vm466_vm5, %vm466_vm5 }
  0x4d   :  { %v171_v61 = vunpack.c.0.s8 %v163_v60  ;;  %vm153_vm4 = vmpackc.even %vm152_vm1, %vm152_vm1 }
  0x4e   :  { %vm154_vm2 = vmpackc.low %vm467_vm9, %vm467_vm9  ;;  %v164_v63 = vsel %vm153_vm4, 16843009, %v257_v4 }
  0x4f   :  { %v177_v0 = vpack.c.b16 %v171_v61, %v170_v59  ;;  %vm155_vm10 = vmpackc.even %vm154_vm2, %vm154_vm2  ;;  %v172_v3 = vunpack.c.0.s8 %v164_v63 }
  0x50   :  { %vm156_vm13 = vmpackc.low %vm468_vm15, %vm468_vm15  ;;  %v165_v1 = vsel %vm155_vm10, 16843009, %v257_v4 }
  0x51   :  { %v178_v2 = vpack.c.b8 %v177_v0, %v176_v62  ;;  %vm157_vm8 = vmpackc.even %vm156_vm13, %vm156_vm13  ;;  %v173_v5 = vunpack.c.0.s8 %v165_v1 }
  0x52   :  { %vm158_vm12 = vmpackc.low %vm38_vm3, %vm38_vm3  ;;  %v166_v6 = vsel %vm157_vm8, 16843009, %v257_v4 }
  0x53   :  { %183 = vst [vmem:[#allocation5 + $0x20] sm:$0xff] %v178_v2  ;;  %vm159_vm6 = vmpackc.even %vm158_vm12, %vm158_vm12  ;;  %v174_v7 = vunpack.c.0.s8 %v166_v6  ;;  %v179_v10 = vpack.c.b16 %v173_v5, %v172_v3 }
  0x54   :  { %v167_v8 = vsel %vm159_vm6, 16843009, %v257_v4 }
  0x55   :  { %v175_v9 = vunpack.c.0.s8 %v167_v8 }
  0x57   :  { %v180_v11 = vpack.c.b16 %v175_v9, %v174_v7 }
  0x59   :  { %v181_v12 = vpack.c.b8 %v180_v11, %v179_v10 }
  0x5b   :  { %184 = vst [vmem:[#allocation5 + $0x28] sm:$0xff] %v181_v12 }
  0x5c   :  { %241 = shalt.err (!%p238_p12)
}
  0x5d   :  { %s242_s22 = scalar_lea.hbm %s448_s1, 768 }
  0x5e   :  { %p243_p13 = scmp.ne.s32.totalorder %s448_s1, %s242_s22  ;;  %p246_p0 = scmp.lt.u32.totalorder %s242_s22, %s448_s1 }
  0x60   :  { %p248_p1 = pnand %p246_p0, %p243_p13 }
  0x62   :  { %251 = shalt.err (!%p248_p1)
}
  0x63   :  { %s260_s27 = smov 256   ;;  %s261_s28 = smov 16  }
  0x64   :  { %196 = dma.vmem_to_hbm [thread:$0]  %s191_s18, 768, %s448_s1, [#allocation4], %s260_s27, %s260_s27, %s261_s28  }
  0x65   :  { %254 = dma.done.wait [#allocation4], 768  }
  0x66   :  { %255 = vsyncadd [#allocation4], 4294966528 }
  0x67   :  { %200 = vsyncpa [#allocation3], 1 }
  0x68   :  { %201 = vsyncpa [#allocation4], 1 }

</bundles_post_ra>
